<compile_context>
chip_gen: v7x
topology: tpu7x:2x2x1
jax: 0.10.0
libtpu: 0.0.40
codegen_flags: <defaults>
</compile_context>

<pallas_src>
import functools

import jax
import jax.numpy as jnp
from jax.experimental import pallas as pl
from jax.experimental.pallas import tpu as pltpu


def _embeddings_kernel(ids_ref,          # SMEM (B*S,) int32   -- scalar prefetch
                       tok_hbm,          # ANY/HBM (V, E)      -- token embedding table
                       pos_ref,          # VMEM (S, E)         -- positional rows 0..S-1
                       gamma_ref,        # VMEM (1, E)         -- LayerNorm weight
                       beta_ref,         # VMEM (1, E)         -- LayerNorm bias
                       o_ref,            # VMEM (B*S, E)       -- output slab
                       gbuf,             # VMEM scratch (B*S, E) gather buffer
                       sems,             # DMA semaphores (B*S,)
                       *, batch, seq, eps):
    n_rows = batch * seq

    # --- Gather all token-embedding rows HBM -> VMEM ------------------------
    # Issue every DMA first (all in flight), then wait for all of them.
    copies = []
    for r in range(n_rows):                                   # static unroll (small B*S)
        idx = ids_ref[r]                                      # dynamic row id from SMEM
        cp = pltpu.make_async_copy(tok_hbm.at[pl.ds(idx, 1)],  # (1, E) HBM row
                                   gbuf.at[pl.ds(r, 1)],       # (1, E) VMEM row
                                   sems.at[r])
        cp.start()
        copies.append(cp)
    for cp in copies:
        cp.wait()

    # --- token + positional embeddings, vectorized over all B*S rows --------
    tok = gbuf[...]                                           # (B*S, E) f32
    pos = jnp.tile(pos_ref[...], (batch, 1))                  # (B*S, E)
    x = tok + pos

    # --- LayerNorm over the embedding axis (eps=1e-12, biased variance) -----
    mean = jnp.mean(x, axis=-1, keepdims=True)
    xc = x - mean
    var = jnp.mean(xc * xc, axis=-1, keepdims=True)
    inv = jax.lax.rsqrt(var + eps)                            # EUP slot
    y = xc * inv * gamma_ref[...] + beta_ref[...]

    # TODO(synk): training-mode dropout (p=0.5) is omitted; this implements the
    # eval-mode forward (dropout == identity), i.e. module.eval() semantics.
    o_ref[...] = y.astype(o_ref.dtype)


def embeddings_forward(input_ids, tok_table, pos_table, gamma, beta, *, eps=1e-12):
    B, S = input_ids.shape
    V, E = tok_table.shape

    ids_flat = input_ids.reshape(B * S).astype(jnp.int32)   # .long() -> int32 row ids
    pos_slab = pos_table[:S]                                 # pos ids are arange(S): static slice
    gamma2d = gamma.reshape(1, E)
    beta2d = beta.reshape(1, E)

    kernel = functools.partial(_embeddings_kernel, batch=B, seq=S, eps=eps)

    out = pl.pallas_call(
        kernel,
        out_shape=jax.ShapeDtypeStruct((B * S, E), tok_table.dtype),
        grid_spec=pltpu.PrefetchScalarGridSpec(
            num_scalar_prefetch=1,
            grid=(1,),                                        # whole batch in one step
            in_specs=[
                pl.BlockSpec(memory_space=pl.ANY),            # token table stays in HBM
                pl.BlockSpec((S, E), lambda i, ids: (0, 0)),  # positional rows
                pl.BlockSpec((1, E), lambda i, ids: (0, 0)),  # gamma
                pl.BlockSpec((1, E), lambda i, ids: (0, 0)),  # beta
            ],
            out_specs=pl.BlockSpec((B * S, E), lambda i, ids: (0, 0)),
            scratch_shapes=[
                pltpu.VMEM((B * S, E), jnp.float32),
                pltpu.SemaphoreType.DMA((B * S,)),
            ],
        ),
        compiler_params=pltpu.CompilerParams(
            dimension_semantics=("arbitrary",)),
    )(ids_flat, tok_table, pos_slab, gamma2d, beta2d)

    return out.reshape(B, S, E)


def _reference(input_ids, tok_table, pos_table, gamma, beta, eps=1e-12):
    """Pure-JAX replica of the PyTorch Embeddings forward (eval mode)."""
    S = input_ids.shape[1]
    tok = tok_table[input_ids]                    # (B, S, E)
    pos = pos_table[:S][None, :, :]               # (1, S, E)
    x = tok + pos
    mean = jnp.mean(x, axis=-1, keepdims=True)
    var = jnp.mean((x - mean) ** 2, axis=-1, keepdims=True)
    y = (x - mean) / jnp.sqrt(var + eps)
    return y * gamma + beta


if __name__ == "__main__":
    B, S, E, V = 2, 8, 32, 128   # batch, seq, emb_size, vocab_size

    key = jax.random.PRNGKey(0)
    k_ids, k_tok, k_pos, k_g, k_b = jax.random.split(key, 5)

    input_ids = jax.random.randint(k_ids, (B, S), 0, V, dtype=jnp.int32)
    tok_table = jax.random.normal(k_tok, (V, E), jnp.float32)
    pos_table = jax.random.normal(k_pos, (V, E), jnp.float32)
    gamma = jax.random.uniform(k_g, (E,), jnp.float32, 0.5, 1.5)
    beta = jax.random.uniform(k_b, (E,), jnp.float32, -0.5, 0.5)

    out = embeddings_forward(input_ids, tok_table, pos_table, gamma, beta)
    out = jax.block_until_ready(out)

    ref = _reference(input_ids, tok_table, pos_table, gamma, beta)
    assert out.shape == (B, S, E)
    assert jnp.allclose(out, ref, atol=1e-4, rtol=1e-4), "mismatch vs reference"

    print("KERNEL_OK")
</pallas_src>

<mosaic_0001>
module attributes {stable_mosaic.version = 11 : i64} {
  func.func @_embeddings_kernel(%arg0: i32, %arg1: memref<16xi32, #tpu.memory_space<smem>>, %arg2: memref<128x32xf32, #tpu.memory_space<any>>, %arg3: memref<8x32xf32, #tpu.memory_space<vmem>>, %arg4: memref<1x32xf32, #tpu.memory_space<vmem>>, %arg5: memref<1x32xf32, #tpu.memory_space<vmem>>, %arg6: memref<16x32xf32, #tpu.memory_space<vmem>>, %arg7: memref<16x32xf32, #tpu.memory_space<vmem>>, %arg8: memref<16x!tpu.dma_semaphore, #tpu.memory_space<semaphore_mem>>) attributes {dimension_semantics = [#tpu.dimension_semantics<arbitrary>], iteration_bounds = array<i64: 1>, scalar_prefetch = 1 : i64, scratch_operands = 2 : i64, tpu.core_type = #tpu.core_type<tc>, window_params = [{}, {pipeline_mode = #tpu.pipeline_mode<synchronous>, transform_indices = @transform_1, window_bounds = array<i64: 8, 32>}, {pipeline_mode = #tpu.pipeline_mode<synchronous>, transform_indices = @transform_2, window_bounds = array<i64: 1, 32>}, {pipeline_mode = #tpu.pipeline_mode<synchronous>, transform_indices = @transform_3, window_bounds = array<i64: 1, 32>}, {pipeline_mode = #tpu.pipeline_mode<synchronous>, transform_indices = @transform_4, window_bounds = array<i64: 16, 32>}]} {
    %c0 = arith.constant 0 : index
    %0 = memref.load %arg1[%c0] : memref<16xi32, #tpu.memory_space<smem>>
    %c0_i32 = arith.constant 0 : i32
    %c0_i32_0 = arith.constant 0 : i32
    %1 = tpu.memref_slice %arg2[%0, %c0_i32_0] : memref<128x32xf32, #tpu.memory_space<any>> -> memref<1x32xf32, #tpu.memory_space<any>>
    %c0_i32_1 = arith.constant 0 : i32
    %c0_i32_2 = arith.constant 0 : i32
    %2 = tpu.memref_slice %arg7[%c0_i32_1, %c0_i32_2] : memref<16x32xf32, #tpu.memory_space<vmem>> -> memref<1x32xf32, #tpu.memory_space<vmem>>
    %3 = tpu.memref_slice %arg8[%c0_i32] : memref<16x!tpu.dma_semaphore, #tpu.memory_space<semaphore_mem>> -> memref<1x!tpu.dma_semaphore, #tpu.memory_space<semaphore_mem>>
    %4 = tpu.memref_squeeze %3 : memref<1x!tpu.dma_semaphore, #tpu.memory_space<semaphore_mem>> -> memref<!tpu.dma_semaphore, #tpu.memory_space<semaphore_mem>>
    tpu.enqueue_dma source(%1 : memref<1x32xf32, #tpu.memory_space<any>>) target(%2 : memref<1x32xf32, #tpu.memory_space<vmem>>) target_semaphore(%4 : memref<!tpu.dma_semaphore, #tpu.memory_space<semaphore_mem>>)
    %c1 = arith.constant 1 : index
    %5 = memref.load %arg1[%c1] : memref<16xi32, #tpu.memory_space<smem>>
    %c1_i32 = arith.constant 1 : i32
    %c0_i32_3 = arith.constant 0 : i32
    %6 = tpu.memref_slice %arg2[%5, %c0_i32_3] : memref<128x32xf32, #tpu.memory_space<any>> -> memref<1x32xf32, #tpu.memory_space<any>>
    %c1_i32_4 = arith.constant 1 : i32
    %c0_i32_5 = arith.constant 0 : i32
    %7 = tpu.memref_slice %arg7[%c1_i32_4, %c0_i32_5] : memref<16x32xf32, #tpu.memory_space<vmem>> -> memref<1x32xf32, #tpu.memory_space<vmem>>
    %8 = tpu.memref_slice %arg8[%c1_i32] : memref<16x!tpu.dma_semaphore, #tpu.memory_space<semaphore_mem>> -> memref<1x!tpu.dma_semaphore, #tpu.memory_space<semaphore_mem>>
    %9 = tpu.memref_squeeze %8 : memref<1x!tpu.dma_semaphore, #tpu.memory_space<semaphore_mem>> -> memref<!tpu.dma_semaphore, #tpu.memory_space<semaphore_mem>>
    tpu.enqueue_dma source(%6 : memref<1x32xf32, #tpu.memory_space<any>>) target(%7 : memref<1x32xf32, #tpu.memory_space<vmem>>) target_semaphore(%9 : memref<!tpu.dma_semaphore, #tpu.memory_space<semaphore_mem>>)
    %c2 = arith.constant 2 : index
    %10 = memref.load %arg1[%c2] : memref<16xi32, #tpu.memory_space<smem>>
    %c2_i32 = arith.constant 2 : i32
    %c0_i32_6 = arith.constant 0 : i32
    %11 = tpu.memref_slice %arg2[%10, %c0_i32_6] : memref<128x32xf32, #tpu.memory_space<any>> -> memref<1x32xf32, #tpu.memory_space<any>>
    %c2_i32_7 = arith.constant 2 : i32
    %c0_i32_8 = arith.constant 0 : i32
    %12 = tpu.memref_slice %arg7[%c2_i32_7, %c0_i32_8] : memref<16x32xf32, #tpu.memory_space<vmem>> -> memref<1x32xf32, #tpu.memory_space<vmem>>
    %13 = tpu.memref_slice %arg8[%c2_i32] : memref<16x!tpu.dma_semaphore, #tpu.memory_space<semaphore_mem>> -> memref<1x!tpu.dma_semaphore, #tpu.memory_space<semaphore_mem>>
    %14 = tpu.memref_squeeze %13 : memref<1x!tpu.dma_semaphore, #tpu.memory_space<semaphore_mem>> -> memref<!tpu.dma_semaphore, #tpu.memory_space<semaphore_mem>>
    tpu.enqueue_dma source(%11 : memref<1x32xf32, #tpu.memory_space<any>>) target(%12 : memref<1x32xf32, #tpu.memory_space<vmem>>) target_semaphore(%14 : memref<!tpu.dma_semaphore, #tpu.memory_space<semaphore_mem>>)
    %c3 = arith.constant 3 : index
    %15 = memref.load %arg1[%c3] : memref<16xi32, #tpu.memory_space<smem>>
    %c3_i32 = arith.constant 3 : i32
    %c0_i32_9 = arith.constant 0 : i32
    %16 = tpu.memref_slice %arg2[%15, %c0_i32_9] : memref<128x32xf32, #tpu.memory_space<any>> -> memref<1x32xf32, #tpu.memory_space<any>>
    %c3_i32_10 = arith.constant 3 : i32
    %c0_i32_11 = arith.constant 0 : i32
    %17 = tpu.memref_slice %arg7[%c3_i32_10, %c0_i32_11] : memref<16x32xf32, #tpu.memory_space<vmem>> -> memref<1x32xf32, #tpu.memory_space<vmem>>
    %18 = tpu.memref_slice %arg8[%c3_i32] : memref<16x!tpu.dma_semaphore, #tpu.memory_space<semaphore_mem>> -> memref<1x!tpu.dma_semaphore, #tpu.memory_space<semaphore_mem>>
    %19 = tpu.memref_squeeze %18 : memref<1x!tpu.dma_semaphore, #tpu.memory_space<semaphore_mem>> -> memref<!tpu.dma_semaphore, #tpu.memory_space<semaphore_mem>>
    tpu.enqueue_dma source(%16 : memref<1x32xf32, #tpu.memory_space<any>>) target(%17 : memref<1x32xf32, #tpu.memory_space<vmem>>) target_semaphore(%19 : memref<!tpu.dma_semaphore, #tpu.memory_space<semaphore_mem>>)
    %c4 = arith.constant 4 : index
    %20 = memref.load %arg1[%c4] : memref<16xi32, #tpu.memory_space<smem>>
    %c4_i32 = arith.constant 4 : i32
    %c0_i32_12 = arith.constant 0 : i32
    %21 = tpu.memref_slice %arg2[%20, %c0_i32_12] : memref<128x32xf32, #tpu.memory_space<any>> -> memref<1x32xf32, #tpu.memory_space<any>>
    %c4_i32_13 = arith.constant 4 : i32
    %c0_i32_14 = arith.constant 0 : i32
    %22 = tpu.memref_slice %arg7[%c4_i32_13, %c0_i32_14] : memref<16x32xf32, #tpu.memory_space<vmem>> -> memref<1x32xf32, #tpu.memory_space<vmem>>
    %23 = tpu.memref_slice %arg8[%c4_i32] : memref<16x!tpu.dma_semaphore, #tpu.memory_space<semaphore_mem>> -> memref<1x!tpu.dma_semaphore, #tpu.memory_space<semaphore_mem>>
    %24 = tpu.memref_squeeze %23 : memref<1x!tpu.dma_semaphore, #tpu.memory_space<semaphore_mem>> -> memref<!tpu.dma_semaphore, #tpu.memory_space<semaphore_mem>>
    tpu.enqueue_dma source(%21 : memref<1x32xf32, #tpu.memory_space<any>>) target(%22 : memref<1x32xf32, #tpu.memory_space<vmem>>) target_semaphore(%24 : memref<!tpu.dma_semaphore, #tpu.memory_space<semaphore_mem>>)
    %c5 = arith.constant 5 : index
    %25 = memref.load %arg1[%c5] : memref<16xi32, #tpu.memory_space<smem>>
    %c5_i32 = arith.constant 5 : i32
    %c0_i32_15 = arith.constant 0 : i32
    %26 = tpu.memref_slice %arg2[%25, %c0_i32_15] : memref<128x32xf32, #tpu.memory_space<any>> -> memref<1x32xf32, #tpu.memory_space<any>>
    %c5_i32_16 = arith.constant 5 : i32
    %c0_i32_17 = arith.constant 0 : i32
    %27 = tpu.memref_slice %arg7[%c5_i32_16, %c0_i32_17] : memref<16x32xf32, #tpu.memory_space<vmem>> -> memref<1x32xf32, #tpu.memory_space<vmem>>
    %28 = tpu.memref_slice %arg8[%c5_i32] : memref<16x!tpu.dma_semaphore, #tpu.memory_space<semaphore_mem>> -> memref<1x!tpu.dma_semaphore, #tpu.memory_space<semaphore_mem>>
    %29 = tpu.memref_squeeze %28 : memref<1x!tpu.dma_semaphore, #tpu.memory_space<semaphore_mem>> -> memref<!tpu.dma_semaphore, #tpu.memory_space<semaphore_mem>>
    tpu.enqueue_dma source(%26 : memref<1x32xf32, #tpu.memory_space<any>>) target(%27 : memref<1x32xf32, #tpu.memory_space<vmem>>) target_semaphore(%29 : memref<!tpu.dma_semaphore, #tpu.memory_space<semaphore_mem>>)
    %c6 = arith.constant 6 : index
    %30 = memref.load %arg1[%c6] : memref<16xi32, #tpu.memory_space<smem>>
    %c6_i32 = arith.constant 6 : i32
    %c0_i32_18 = arith.constant 0 : i32
    %31 = tpu.memref_slice %arg2[%30, %c0_i32_18] : memref<128x32xf32, #tpu.memory_space<any>> -> memref<1x32xf32, #tpu.memory_space<any>>
    %c6_i32_19 = arith.constant 6 : i32
    %c0_i32_20 = arith.constant 0 : i32
    %32 = tpu.memref_slice %arg7[%c6_i32_19, %c0_i32_20] : memref<16x32xf32, #tpu.memory_space<vmem>> -> memref<1x32xf32, #tpu.memory_space<vmem>>
    %33 = tpu.memref_slice %arg8[%c6_i32] : memref<16x!tpu.dma_semaphore, #tpu.memory_space<semaphore_mem>> -> memref<1x!tpu.dma_semaphore, #tpu.memory_space<semaphore_mem>>
    %34 = tpu.memref_squeeze %33 : memref<1x!tpu.dma_semaphore, #tpu.memory_space<semaphore_mem>> -> memref<!tpu.dma_semaphore, #tpu.memory_space<semaphore_mem>>
    tpu.enqueue_dma source(%31 : memref<1x32xf32, #tpu.memory_space<any>>) target(%32 : memref<1x32xf32, #tpu.memory_space<vmem>>) target_semaphore(%34 : memref<!tpu.dma_semaphore, #tpu.memory_space<semaphore_mem>>)
    %c7 = arith.constant 7 : index
    %35 = memref.load %arg1[%c7] : memref<16xi32, #tpu.memory_space<smem>>
    %c7_i32 = arith.constant 7 : i32
    %c0_i32_21 = arith.constant 0 : i32
    %36 = tpu.memref_slice %arg2[%35, %c0_i32_21] : memref<128x32xf32, #tpu.memory_space<any>> -> memref<1x32xf32, #tpu.memory_space<any>>
    %c7_i32_22 = arith.constant 7 : i32
    %c0_i32_23 = arith.constant 0 : i32
    %37 = tpu.memref_slice %arg7[%c7_i32_22, %c0_i32_23] : memref<16x32xf32, #tpu.memory_space<vmem>> -> memref<1x32xf32, #tpu.memory_space<vmem>>
    %38 = tpu.memref_slice %arg8[%c7_i32] : memref<16x!tpu.dma_semaphore, #tpu.memory_space<semaphore_mem>> -> memref<1x!tpu.dma_semaphore, #tpu.memory_space<semaphore_mem>>
    %39 = tpu.memref_squeeze %38 : memref<1x!tpu.dma_semaphore, #tpu.memory_space<semaphore_mem>> -> memref<!tpu.dma_semaphore, #tpu.memory_space<semaphore_mem>>
    tpu.enqueue_dma source(%36 : memref<1x32xf32, #tpu.memory_space<any>>) target(%37 : memref<1x32xf32, #tpu.memory_space<vmem>>) target_semaphore(%39 : memref<!tpu.dma_semaphore, #tpu.memory_space<semaphore_mem>>)
    %c8 = arith.constant 8 : index
    %40 = memref.load %arg1[%c8] : memref<16xi32, #tpu.memory_space<smem>>
    %c8_i32 = arith.constant 8 : i32
    %c0_i32_24 = arith.constant 0 : i32
    %41 = tpu.memref_slice %arg2[%40, %c0_i32_24] : memref<128x32xf32, #tpu.memory_space<any>> -> memref<1x32xf32, #tpu.memory_space<any>>
    %c8_i32_25 = arith.constant 8 : i32
    %c0_i32_26 = arith.constant 0 : i32
    %42 = tpu.memref_slice %arg7[%c8_i32_25, %c0_i32_26] : memref<16x32xf32, #tpu.memory_space<vmem>> -> memref<1x32xf32, #tpu.memory_space<vmem>>
    %43 = tpu.memref_slice %arg8[%c8_i32] : memref<16x!tpu.dma_semaphore, #tpu.memory_space<semaphore_mem>> -> memref<1x!tpu.dma_semaphore, #tpu.memory_space<semaphore_mem>>
    %44 = tpu.memref_squeeze %43 : memref<1x!tpu.dma_semaphore, #tpu.memory_space<semaphore_mem>> -> memref<!tpu.dma_semaphore, #tpu.memory_space<semaphore_mem>>
    tpu.enqueue_dma source(%41 : memref<1x32xf32, #tpu.memory_space<any>>) target(%42 : memref<1x32xf32, #tpu.memory_space<vmem>>) target_semaphore(%44 : memref<!tpu.dma_semaphore, #tpu.memory_space<semaphore_mem>>)
    %c9 = arith.constant 9 : index
    %45 = memref.load %arg1[%c9] : memref<16xi32, #tpu.memory_space<smem>>
    %c9_i32 = arith.constant 9 : i32
    %c0_i32_27 = arith.constant 0 : i32
    %46 = tpu.memref_slice %arg2[%45, %c0_i32_27] : memref<128x32xf32, #tpu.memory_space<any>> -> memref<1x32xf32, #tpu.memory_space<any>>
    %c9_i32_28 = arith.constant 9 : i32
    %c0_i32_29 = arith.constant 0 : i32
    %47 = tpu.memref_slice %arg7[%c9_i32_28, %c0_i32_29] : memref<16x32xf32, #tpu.memory_space<vmem>> -> memref<1x32xf32, #tpu.memory_space<vmem>>
    %48 = tpu.memref_slice %arg8[%c9_i32] : memref<16x!tpu.dma_semaphore, #tpu.memory_space<semaphore_mem>> -> memref<1x!tpu.dma_semaphore, #tpu.memory_space<semaphore_mem>>
    %49 = tpu.memref_squeeze %48 : memref<1x!tpu.dma_semaphore, #tpu.memory_space<semaphore_mem>> -> memref<!tpu.dma_semaphore, #tpu.memory_space<semaphore_mem>>
    tpu.enqueue_dma source(%46 : memref<1x32xf32, #tpu.memory_space<any>>) target(%47 : memref<1x32xf32, #tpu.memory_space<vmem>>) target_semaphore(%49 : memref<!tpu.dma_semaphore, #tpu.memory_space<semaphore_mem>>)
    %c10 = arith.constant 10 : index
    %50 = memref.load %arg1[%c10] : memref<16xi32, #tpu.memory_space<smem>>
    %c10_i32 = arith.constant 10 : i32
    %c0_i32_30 = arith.constant 0 : i32
    %51 = tpu.memref_slice %arg2[%50, %c0_i32_30] : memref<128x32xf32, #tpu.memory_space<any>> -> memref<1x32xf32, #tpu.memory_space<any>>
    %c10_i32_31 = arith.constant 10 : i32
    %c0_i32_32 = arith.constant 0 : i32
    %52 = tpu.memref_slice %arg7[%c10_i32_31, %c0_i32_32] : memref<16x32xf32, #tpu.memory_space<vmem>> -> memref<1x32xf32, #tpu.memory_space<vmem>>
    %53 = tpu.memref_slice %arg8[%c10_i32] : memref<16x!tpu.dma_semaphore, #tpu.memory_space<semaphore_mem>> -> memref<1x!tpu.dma_semaphore, #tpu.memory_space<semaphore_mem>>
    %54 = tpu.memref_squeeze %53 : memref<1x!tpu.dma_semaphore, #tpu.memory_space<semaphore_mem>> -> memref<!tpu.dma_semaphore, #tpu.memory_space<semaphore_mem>>
    tpu.enqueue_dma source(%51 : memref<1x32xf32, #tpu.memory_space<any>>) target(%52 : memref<1x32xf32, #tpu.memory_space<vmem>>) target_semaphore(%54 : memref<!tpu.dma_semaphore, #tpu.memory_space<semaphore_mem>>)
    %c11 = arith.constant 11 : index
    %55 = memref.load %arg1[%c11] : memref<16xi32, #tpu.memory_space<smem>>
    %c11_i32 = arith.constant 11 : i32
    %c0_i32_33 = arith.constant 0 : i32
    %56 = tpu.memref_slice %arg2[%55, %c0_i32_33] : memref<128x32xf32, #tpu.memory_space<any>> -> memref<1x32xf32, #tpu.memory_space<any>>
    %c11_i32_34 = arith.constant 11 : i32
    %c0_i32_35 = arith.constant 0 : i32
    %57 = tpu.memref_slice %arg7[%c11_i32_34, %c0_i32_35] : memref<16x32xf32, #tpu.memory_space<vmem>> -> memref<1x32xf32, #tpu.memory_space<vmem>>
    %58 = tpu.memref_slice %arg8[%c11_i32] : memref<16x!tpu.dma_semaphore, #tpu.memory_space<semaphore_mem>> -> memref<1x!tpu.dma_semaphore, #tpu.memory_space<semaphore_mem>>
    %59 = tpu.memref_squeeze %58 : memref<1x!tpu.dma_semaphore, #tpu.memory_space<semaphore_mem>> -> memref<!tpu.dma_semaphore, #tpu.memory_space<semaphore_mem>>
    tpu.enqueue_dma source(%56 : memref<1x32xf32, #tpu.memory_space<any>>) target(%57 : memref<1x32xf32, #tpu.memory_space<vmem>>) target_semaphore(%59 : memref<!tpu.dma_semaphore, #tpu.memory_space<semaphore_mem>>)
    %c12 = arith.constant 12 : index
    %60 = memref.load %arg1[%c12] : memref<16xi32, #tpu.memory_space<smem>>
    %c12_i32 = arith.constant 12 : i32
    %c0_i32_36 = arith.constant 0 : i32
    %61 = tpu.memref_slice %arg2[%60, %c0_i32_36] : memref<128x32xf32, #tpu.memory_space<any>> -> memref<1x32xf32, #tpu.memory_space<any>>
    %c12_i32_37 = arith.constant 12 : i32
    %c0_i32_38 = arith.constant 0 : i32
    %62 = tpu.memref_slice %arg7[%c12_i32_37, %c0_i32_38] : memref<16x32xf32, #tpu.memory_space<vmem>> -> memref<1x32xf32, #tpu.memory_space<vmem>>
    %63 = tpu.memref_slice %arg8[%c12_i32] : memref<16x!tpu.dma_semaphore, #tpu.memory_space<semaphore_mem>> -> memref<1x!tpu.dma_semaphore, #tpu.memory_space<semaphore_mem>>
    %64 = tpu.memref_squeeze %63 : memref<1x!tpu.dma_semaphore, #tpu.memory_space<semaphore_mem>> -> memref<!tpu.dma_semaphore, #tpu.memory_space<semaphore_mem>>
    tpu.enqueue_dma source(%61 : memref<1x32xf32, #tpu.memory_space<any>>) target(%62 : memref<1x32xf32, #tpu.memory_space<vmem>>) target_semaphore(%64 : memref<!tpu.dma_semaphore, #tpu.memory_space<semaphore_mem>>)
    %c13 = arith.constant 13 : index
    %65 = memref.load %arg1[%c13] : memref<16xi32, #tpu.memory_space<smem>>
    %c13_i32 = arith.constant 13 : i32
    %c0_i32_39 = arith.constant 0 : i32
    %66 = tpu.memref_slice %arg2[%65, %c0_i32_39] : memref<128x32xf32, #tpu.memory_space<any>> -> memref<1x32xf32, #tpu.memory_space<any>>
    %c13_i32_40 = arith.constant 13 : i32
    %c0_i32_41 = arith.constant 0 : i32
    %67 = tpu.memref_slice %arg7[%c13_i32_40, %c0_i32_41] : memref<16x32xf32, #tpu.memory_space<vmem>> -> memref<1x32xf32, #tpu.memory_space<vmem>>
    %68 = tpu.memref_slice %arg8[%c13_i32] : memref<16x!tpu.dma_semaphore, #tpu.memory_space<semaphore_mem>> -> memref<1x!tpu.dma_semaphore, #tpu.memory_space<semaphore_mem>>
    %69 = tpu.memref_squeeze %68 : memref<1x!tpu.dma_semaphore, #tpu.memory_space<semaphore_mem>> -> memref<!tpu.dma_semaphore, #tpu.memory_space<semaphore_mem>>
    tpu.enqueue_dma source(%66 : memref<1x32xf32, #tpu.memory_space<any>>) target(%67 : memref<1x32xf32, #tpu.memory_space<vmem>>) target_semaphore(%69 : memref<!tpu.dma_semaphore, #tpu.memory_space<semaphore_mem>>)
    %c14 = arith.constant 14 : index
    %70 = memref.load %arg1[%c14] : memref<16xi32, #tpu.memory_space<smem>>
    %c14_i32 = arith.constant 14 : i32
    %c0_i32_42 = arith.constant 0 : i32
    %71 = tpu.memref_slice %arg2[%70, %c0_i32_42] : memref<128x32xf32, #tpu.memory_space<any>> -> memref<1x32xf32, #tpu.memory_space<any>>
    %c14_i32_43 = arith.constant 14 : i32
    %c0_i32_44 = arith.constant 0 : i32
    %72 = tpu.memref_slice %arg7[%c14_i32_43, %c0_i32_44] : memref<16x32xf32, #tpu.memory_space<vmem>> -> memref<1x32xf32, #tpu.memory_space<vmem>>
    %73 = tpu.memref_slice %arg8[%c14_i32] : memref<16x!tpu.dma_semaphore, #tpu.memory_space<semaphore_mem>> -> memref<1x!tpu.dma_semaphore, #tpu.memory_space<semaphore_mem>>
    %74 = tpu.memref_squeeze %73 : memref<1x!tpu.dma_semaphore, #tpu.memory_space<semaphore_mem>> -> memref<!tpu.dma_semaphore, #tpu.memory_space<semaphore_mem>>
    tpu.enqueue_dma source(%71 : memref<1x32xf32, #tpu.memory_space<any>>) target(%72 : memref<1x32xf32, #tpu.memory_space<vmem>>) target_semaphore(%74 : memref<!tpu.dma_semaphore, #tpu.memory_space<semaphore_mem>>)
    %c15 = arith.constant 15 : index
    %75 = memref.load %arg1[%c15] : memref<16xi32, #tpu.memory_space<smem>>
    %c15_i32 = arith.constant 15 : i32
    %c0_i32_45 = arith.constant 0 : i32
    %76 = tpu.memref_slice %arg2[%75, %c0_i32_45] : memref<128x32xf32, #tpu.memory_space<any>> -> memref<1x32xf32, #tpu.memory_space<any>>
    %c15_i32_46 = arith.constant 15 : i32
    %c0_i32_47 = arith.constant 0 : i32
    %77 = tpu.memref_slice %arg7[%c15_i32_46, %c0_i32_47] : memref<16x32xf32, #tpu.memory_space<vmem>> -> memref<1x32xf32, #tpu.memory_space<vmem>>
    %78 = tpu.memref_slice %arg8[%c15_i32] : memref<16x!tpu.dma_semaphore, #tpu.memory_space<semaphore_mem>> -> memref<1x!tpu.dma_semaphore, #tpu.memory_space<semaphore_mem>>
    %79 = tpu.memref_squeeze %78 : memref<1x!tpu.dma_semaphore, #tpu.memory_space<semaphore_mem>> -> memref<!tpu.dma_semaphore, #tpu.memory_space<semaphore_mem>>
    tpu.enqueue_dma source(%76 : memref<1x32xf32, #tpu.memory_space<any>>) target(%77 : memref<1x32xf32, #tpu.memory_space<vmem>>) target_semaphore(%79 : memref<!tpu.dma_semaphore, #tpu.memory_space<semaphore_mem>>)
    %c0_i32_48 = arith.constant 0 : i32
    %c0_i32_49 = arith.constant 0 : i32
    %80 = tpu.memref_slice %arg2[%0, %c0_i32_49] : memref<128x32xf32, #tpu.memory_space<any>> -> memref<1x32xf32, #tpu.memory_space<any>>
    %c0_i32_50 = arith.constant 0 : i32
    %c0_i32_51 = arith.constant 0 : i32
    %81 = tpu.memref_slice %arg7[%c0_i32_50, %c0_i32_51] : memref<16x32xf32, #tpu.memory_space<vmem>> -> memref<1x32xf32, #tpu.memory_space<vmem>>
    %82 = tpu.memref_slice %arg8[%c0_i32_48] : memref<16x!tpu.dma_semaphore, #tpu.memory_space<semaphore_mem>> -> memref<1x!tpu.dma_semaphore, #tpu.memory_space<semaphore_mem>>
    %83 = tpu.memref_squeeze %82 : memref<1x!tpu.dma_semaphore, #tpu.memory_space<semaphore_mem>> -> memref<!tpu.dma_semaphore, #tpu.memory_space<semaphore_mem>>
    tpu.wait_dma2 semaphore(%83 : memref<!tpu.dma_semaphore, #tpu.memory_space<semaphore_mem>>) src(%80 : memref<1x32xf32, #tpu.memory_space<any>>) dst(%81 : memref<1x32xf32, #tpu.memory_space<vmem>>)
    %c1_i32_52 = arith.constant 1 : i32
    %c0_i32_53 = arith.constant 0 : i32
    %84 = tpu.memref_slice %arg2[%5, %c0_i32_53] : memref<128x32xf32, #tpu.memory_space<any>> -> memref<1x32xf32, #tpu.memory_space<any>>
    %c1_i32_54 = arith.constant 1 : i32
    %c0_i32_55 = arith.constant 0 : i32
    %85 = tpu.memref_slice %arg7[%c1_i32_54, %c0_i32_55] : memref<16x32xf32, #tpu.memory_space<vmem>> -> memref<1x32xf32, #tpu.memory_space<vmem>>
    %86 = tpu.memref_slice %arg8[%c1_i32_52] : memref<16x!tpu.dma_semaphore, #tpu.memory_space<semaphore_mem>> -> memref<1x!tpu.dma_semaphore, #tpu.memory_space<semaphore_mem>>
    %87 = tpu.memref_squeeze %86 : memref<1x!tpu.dma_semaphore, #tpu.memory_space<semaphore_mem>> -> memref<!tpu.dma_semaphore, #tpu.memory_space<semaphore_mem>>
    tpu.wait_dma2 semaphore(%87 : memref<!tpu.dma_semaphore, #tpu.memory_space<semaphore_mem>>) src(%84 : memref<1x32xf32, #tpu.memory_space<any>>) dst(%85 : memref<1x32xf32, #tpu.memory_space<vmem>>)
    %c2_i32_56 = arith.constant 2 : i32
    %c0_i32_57 = arith.constant 0 : i32
    %88 = tpu.memref_slice %arg2[%10, %c0_i32_57] : memref<128x32xf32, #tpu.memory_space<any>> -> memref<1x32xf32, #tpu.memory_space<any>>
    %c2_i32_58 = arith.constant 2 : i32
    %c0_i32_59 = arith.constant 0 : i32
    %89 = tpu.memref_slice %arg7[%c2_i32_58, %c0_i32_59] : memref<16x32xf32, #tpu.memory_space<vmem>> -> memref<1x32xf32, #tpu.memory_space<vmem>>
    %90 = tpu.memref_slice %arg8[%c2_i32_56] : memref<16x!tpu.dma_semaphore, #tpu.memory_space<semaphore_mem>> -> memref<1x!tpu.dma_semaphore, #tpu.memory_space<semaphore_mem>>
    %91 = tpu.memref_squeeze %90 : memref<1x!tpu.dma_semaphore, #tpu.memory_space<semaphore_mem>> -> memref<!tpu.dma_semaphore, #tpu.memory_space<semaphore_mem>>
    tpu.wait_dma2 semaphore(%91 : memref<!tpu.dma_semaphore, #tpu.memory_space<semaphore_mem>>) src(%88 : memref<1x32xf32, #tpu.memory_space<any>>) dst(%89 : memref<1x32xf32, #tpu.memory_space<vmem>>)
    %c3_i32_60 = arith.constant 3 : i32
    %c0_i32_61 = arith.constant 0 : i32
    %92 = tpu.memref_slice %arg2[%15, %c0_i32_61] : memref<128x32xf32, #tpu.memory_space<any>> -> memref<1x32xf32, #tpu.memory_space<any>>
    %c3_i32_62 = arith.constant 3 : i32
    %c0_i32_63 = arith.constant 0 : i32
    %93 = tpu.memref_slice %arg7[%c3_i32_62, %c0_i32_63] : memref<16x32xf32, #tpu.memory_space<vmem>> -> memref<1x32xf32, #tpu.memory_space<vmem>>
    %94 = tpu.memref_slice %arg8[%c3_i32_60] : memref<16x!tpu.dma_semaphore, #tpu.memory_space<semaphore_mem>> -> memref<1x!tpu.dma_semaphore, #tpu.memory_space<semaphore_mem>>
    %95 = tpu.memref_squeeze %94 : memref<1x!tpu.dma_semaphore, #tpu.memory_space<semaphore_mem>> -> memref<!tpu.dma_semaphore, #tpu.memory_space<semaphore_mem>>
    tpu.wait_dma2 semaphore(%95 : memref<!tpu.dma_semaphore, #tpu.memory_space<semaphore_mem>>) src(%92 : memref<1x32xf32, #tpu.memory_space<any>>) dst(%93 : memref<1x32xf32, #tpu.memory_space<vmem>>)
    %c4_i32_64 = arith.constant 4 : i32
    %c0_i32_65 = arith.constant 0 : i32
    %96 = tpu.memref_slice %arg2[%20, %c0_i32_65] : memref<128x32xf32, #tpu.memory_space<any>> -> memref<1x32xf32, #tpu.memory_space<any>>
    %c4_i32_66 = arith.constant 4 : i32
    %c0_i32_67 = arith.constant 0 : i32
    %97 = tpu.memref_slice %arg7[%c4_i32_66, %c0_i32_67] : memref<16x32xf32, #tpu.memory_space<vmem>> -> memref<1x32xf32, #tpu.memory_space<vmem>>
    %98 = tpu.memref_slice %arg8[%c4_i32_64] : memref<16x!tpu.dma_semaphore, #tpu.memory_space<semaphore_mem>> -> memref<1x!tpu.dma_semaphore, #tpu.memory_space<semaphore_mem>>
    %99 = tpu.memref_squeeze %98 : memref<1x!tpu.dma_semaphore, #tpu.memory_space<semaphore_mem>> -> memref<!tpu.dma_semaphore, #tpu.memory_space<semaphore_mem>>
    tpu.wait_dma2 semaphore(%99 : memref<!tpu.dma_semaphore, #tpu.memory_space<semaphore_mem>>) src(%96 : memref<1x32xf32, #tpu.memory_space<any>>) dst(%97 : memref<1x32xf32, #tpu.memory_space<vmem>>)
    %c5_i32_68 = arith.constant 5 : i32
    %c0_i32_69 = arith.constant 0 : i32
    %100 = tpu.memref_slice %arg2[%25, %c0_i32_69] : memref<128x32xf32, #tpu.memory_space<any>> -> memref<1x32xf32, #tpu.memory_space<any>>
    %c5_i32_70 = arith.constant 5 : i32
    %c0_i32_71 = arith.constant 0 : i32
    %101 = tpu.memref_slice %arg7[%c5_i32_70, %c0_i32_71] : memref<16x32xf32, #tpu.memory_space<vmem>> -> memref<1x32xf32, #tpu.memory_space<vmem>>
    %102 = tpu.memref_slice %arg8[%c5_i32_68] : memref<16x!tpu.dma_semaphore, #tpu.memory_space<semaphore_mem>> -> memref<1x!tpu.dma_semaphore, #tpu.memory_space<semaphore_mem>>
    %103 = tpu.memref_squeeze %102 : memref<1x!tpu.dma_semaphore, #tpu.memory_space<semaphore_mem>> -> memref<!tpu.dma_semaphore, #tpu.memory_space<semaphore_mem>>
    tpu.wait_dma2 semaphore(%103 : memref<!tpu.dma_semaphore, #tpu.memory_space<semaphore_mem>>) src(%100 : memref<1x32xf32, #tpu.memory_space<any>>) dst(%101 : memref<1x32xf32, #tpu.memory_space<vmem>>)
    %c6_i32_72 = arith.constant 6 : i32
    %c0_i32_73 = arith.constant 0 : i32
    %104 = tpu.memref_slice %arg2[%30, %c0_i32_73] : memref<128x32xf32, #tpu.memory_space<any>> -> memref<1x32xf32, #tpu.memory_space<any>>
    %c6_i32_74 = arith.constant 6 : i32
    %c0_i32_75 = arith.constant 0 : i32
    %105 = tpu.memref_slice %arg7[%c6_i32_74, %c0_i32_75] : memref<16x32xf32, #tpu.memory_space<vmem>> -> memref<1x32xf32, #tpu.memory_space<vmem>>
    %106 = tpu.memref_slice %arg8[%c6_i32_72] : memref<16x!tpu.dma_semaphore, #tpu.memory_space<semaphore_mem>> -> memref<1x!tpu.dma_semaphore, #tpu.memory_space<semaphore_mem>>
    %107 = tpu.memref_squeeze %106 : memref<1x!tpu.dma_semaphore, #tpu.memory_space<semaphore_mem>> -> memref<!tpu.dma_semaphore, #tpu.memory_space<semaphore_mem>>
    tpu.wait_dma2 semaphore(%107 : memref<!tpu.dma_semaphore, #tpu.memory_space<semaphore_mem>>) src(%104 : memref<1x32xf32, #tpu.memory_space<any>>) dst(%105 : memref<1x32xf32, #tpu.memory_space<vmem>>)
    %c7_i32_76 = arith.constant 7 : i32
    %c0_i32_77 = arith.constant 0 : i32
    %108 = tpu.memref_slice %arg2[%35, %c0_i32_77] : memref<128x32xf32, #tpu.memory_space<any>> -> memref<1x32xf32, #tpu.memory_space<any>>
    %c7_i32_78 = arith.constant 7 : i32
    %c0_i32_79 = arith.constant 0 : i32
    %109 = tpu.memref_slice %arg7[%c7_i32_78, %c0_i32_79] : memref<16x32xf32, #tpu.memory_space<vmem>> -> memref<1x32xf32, #tpu.memory_space<vmem>>
    %110 = tpu.memref_slice %arg8[%c7_i32_76] : memref<16x!tpu.dma_semaphore, #tpu.memory_space<semaphore_mem>> -> memref<1x!tpu.dma_semaphore, #tpu.memory_space<semaphore_mem>>
    %111 = tpu.memref_squeeze %110 : memref<1x!tpu.dma_semaphore, #tpu.memory_space<semaphore_mem>> -> memref<!tpu.dma_semaphore, #tpu.memory_space<semaphore_mem>>
    tpu.wait_dma2 semaphore(%111 : memref<!tpu.dma_semaphore, #tpu.memory_space<semaphore_mem>>) src(%108 : memref<1x32xf32, #tpu.memory_space<any>>) dst(%109 : memref<1x32xf32, #tpu.memory_space<vmem>>)
    %c8_i32_80 = arith.constant 8 : i32
    %c0_i32_81 = arith.constant 0 : i32
    %112 = tpu.memref_slice %arg2[%40, %c0_i32_81] : memref<128x32xf32, #tpu.memory_space<any>> -> memref<1x32xf32, #tpu.memory_space<any>>
    %c8_i32_82 = arith.constant 8 : i32
    %c0_i32_83 = arith.constant 0 : i32
    %113 = tpu.memref_slice %arg7[%c8_i32_82, %c0_i32_83] : memref<16x32xf32, #tpu.memory_space<vmem>> -> memref<1x32xf32, #tpu.memory_space<vmem>>
    %114 = tpu.memref_slice %arg8[%c8_i32_80] : memref<16x!tpu.dma_semaphore, #tpu.memory_space<semaphore_mem>> -> memref<1x!tpu.dma_semaphore, #tpu.memory_space<semaphore_mem>>
    %115 = tpu.memref_squeeze %114 : memref<1x!tpu.dma_semaphore, #tpu.memory_space<semaphore_mem>> -> memref<!tpu.dma_semaphore, #tpu.memory_space<semaphore_mem>>
    tpu.wait_dma2 semaphore(%115 : memref<!tpu.dma_semaphore, #tpu.memory_space<semaphore_mem>>) src(%112 : memref<1x32xf32, #tpu.memory_space<any>>) dst(%113 : memref<1x32xf32, #tpu.memory_space<vmem>>)
    %c9_i32_84 = arith.constant 9 : i32
    %c0_i32_85 = arith.constant 0 : i32
    %116 = tpu.memref_slice %arg2[%45, %c0_i32_85] : memref<128x32xf32, #tpu.memory_space<any>> -> memref<1x32xf32, #tpu.memory_space<any>>
    %c9_i32_86 = arith.constant 9 : i32
    %c0_i32_87 = arith.constant 0 : i32
    %117 = tpu.memref_slice %arg7[%c9_i32_86, %c0_i32_87] : memref<16x32xf32, #tpu.memory_space<vmem>> -> memref<1x32xf32, #tpu.memory_space<vmem>>
    %118 = tpu.memref_slice %arg8[%c9_i32_84] : memref<16x!tpu.dma_semaphore, #tpu.memory_space<semaphore_mem>> -> memref<1x!tpu.dma_semaphore, #tpu.memory_space<semaphore_mem>>
    %119 = tpu.memref_squeeze %118 : memref<1x!tpu.dma_semaphore, #tpu.memory_space<semaphore_mem>> -> memref<!tpu.dma_semaphore, #tpu.memory_space<semaphore_mem>>
    tpu.wait_dma2 semaphore(%119 : memref<!tpu.dma_semaphore, #tpu.memory_space<semaphore_mem>>) src(%116 : memref<1x32xf32, #tpu.memory_space<any>>) dst(%117 : memref<1x32xf32, #tpu.memory_space<vmem>>)
    %c10_i32_88 = arith.constant 10 : i32
    %c0_i32_89 = arith.constant 0 : i32
    %120 = tpu.memref_slice %arg2[%50, %c0_i32_89] : memref<128x32xf32, #tpu.memory_space<any>> -> memref<1x32xf32, #tpu.memory_space<any>>
    %c10_i32_90 = arith.constant 10 : i32
    %c0_i32_91 = arith.constant 0 : i32
    %121 = tpu.memref_slice %arg7[%c10_i32_90, %c0_i32_91] : memref<16x32xf32, #tpu.memory_space<vmem>> -> memref<1x32xf32, #tpu.memory_space<vmem>>
    %122 = tpu.memref_slice %arg8[%c10_i32_88] : memref<16x!tpu.dma_semaphore, #tpu.memory_space<semaphore_mem>> -> memref<1x!tpu.dma_semaphore, #tpu.memory_space<semaphore_mem>>
    %123 = tpu.memref_squeeze %122 : memref<1x!tpu.dma_semaphore, #tpu.memory_space<semaphore_mem>> -> memref<!tpu.dma_semaphore, #tpu.memory_space<semaphore_mem>>
    tpu.wait_dma2 semaphore(%123 : memref<!tpu.dma_semaphore, #tpu.memory_space<semaphore_mem>>) src(%120 : memref<1x32xf32, #tpu.memory_space<any>>) dst(%121 : memref<1x32xf32, #tpu.memory_space<vmem>>)
    %c11_i32_92 = arith.constant 11 : i32
    %c0_i32_93 = arith.constant 0 : i32
    %124 = tpu.memref_slice %arg2[%55, %c0_i32_93] : memref<128x32xf32, #tpu.memory_space<any>> -> memref<1x32xf32, #tpu.memory_space<any>>
    %c11_i32_94 = arith.constant 11 : i32
    %c0_i32_95 = arith.constant 0 : i32
    %125 = tpu.memref_slice %arg7[%c11_i32_94, %c0_i32_95] : memref<16x32xf32, #tpu.memory_space<vmem>> -> memref<1x32xf32, #tpu.memory_space<vmem>>
    %126 = tpu.memref_slice %arg8[%c11_i32_92] : memref<16x!tpu.dma_semaphore, #tpu.memory_space<semaphore_mem>> -> memref<1x!tpu.dma_semaphore, #tpu.memory_space<semaphore_mem>>
    %127 = tpu.memref_squeeze %126 : memref<1x!tpu.dma_semaphore, #tpu.memory_space<semaphore_mem>> -> memref<!tpu.dma_semaphore, #tpu.memory_space<semaphore_mem>>
    tpu.wait_dma2 semaphore(%127 : memref<!tpu.dma_semaphore, #tpu.memory_space<semaphore_mem>>) src(%124 : memref<1x32xf32, #tpu.memory_space<any>>) dst(%125 : memref<1x32xf32, #tpu.memory_space<vmem>>)
    %c12_i32_96 = arith.constant 12 : i32
    %c0_i32_97 = arith.constant 0 : i32
    %128 = tpu.memref_slice %arg2[%60, %c0_i32_97] : memref<128x32xf32, #tpu.memory_space<any>> -> memref<1x32xf32, #tpu.memory_space<any>>
    %c12_i32_98 = arith.constant 12 : i32
    %c0_i32_99 = arith.constant 0 : i32
    %129 = tpu.memref_slice %arg7[%c12_i32_98, %c0_i32_99] : memref<16x32xf32, #tpu.memory_space<vmem>> -> memref<1x32xf32, #tpu.memory_space<vmem>>
    %130 = tpu.memref_slice %arg8[%c12_i32_96] : memref<16x!tpu.dma_semaphore, #tpu.memory_space<semaphore_mem>> -> memref<1x!tpu.dma_semaphore, #tpu.memory_space<semaphore_mem>>
    %131 = tpu.memref_squeeze %130 : memref<1x!tpu.dma_semaphore, #tpu.memory_space<semaphore_mem>> -> memref<!tpu.dma_semaphore, #tpu.memory_space<semaphore_mem>>
    tpu.wait_dma2 semaphore(%131 : memref<!tpu.dma_semaphore, #tpu.memory_space<semaphore_mem>>) src(%128 : memref<1x32xf32, #tpu.memory_space<any>>) dst(%129 : memref<1x32xf32, #tpu.memory_space<vmem>>)
    %c13_i32_100 = arith.constant 13 : i32
    %c0_i32_101 = arith.constant 0 : i32
    %132 = tpu.memref_slice %arg2[%65, %c0_i32_101] : memref<128x32xf32, #tpu.memory_space<any>> -> memref<1x32xf32, #tpu.memory_space<any>>
    %c13_i32_102 = arith.constant 13 : i32
    %c0_i32_103 = arith.constant 0 : i32
    %133 = tpu.memref_slice %arg7[%c13_i32_102, %c0_i32_103] : memref<16x32xf32, #tpu.memory_space<vmem>> -> memref<1x32xf32, #tpu.memory_space<vmem>>
    %134 = tpu.memref_slice %arg8[%c13_i32_100] : memref<16x!tpu.dma_semaphore, #tpu.memory_space<semaphore_mem>> -> memref<1x!tpu.dma_semaphore, #tpu.memory_space<semaphore_mem>>
    %135 = tpu.memref_squeeze %134 : memref<1x!tpu.dma_semaphore, #tpu.memory_space<semaphore_mem>> -> memref<!tpu.dma_semaphore, #tpu.memory_space<semaphore_mem>>
    tpu.wait_dma2 semaphore(%135 : memref<!tpu.dma_semaphore, #tpu.memory_space<semaphore_mem>>) src(%132 : memref<1x32xf32, #tpu.memory_space<any>>) dst(%133 : memref<1x32xf32, #tpu.memory_space<vmem>>)
    %c14_i32_104 = arith.constant 14 : i32
    %c0_i32_105 = arith.constant 0 : i32
    %136 = tpu.memref_slice %arg2[%70, %c0_i32_105] : memref<128x32xf32, #tpu.memory_space<any>> -> memref<1x32xf32, #tpu.memory_space<any>>
    %c14_i32_106 = arith.constant 14 : i32
    %c0_i32_107 = arith.constant 0 : i32
    %137 = tpu.memref_slice %arg7[%c14_i32_106, %c0_i32_107] : memref<16x32xf32, #tpu.memory_space<vmem>> -> memref<1x32xf32, #tpu.memory_space<vmem>>
    %138 = tpu.memref_slice %arg8[%c14_i32_104] : memref<16x!tpu.dma_semaphore, #tpu.memory_space<semaphore_mem>> -> memref<1x!tpu.dma_semaphore, #tpu.memory_space<semaphore_mem>>
    %139 = tpu.memref_squeeze %138 : memref<1x!tpu.dma_semaphore, #tpu.memory_space<semaphore_mem>> -> memref<!tpu.dma_semaphore, #tpu.memory_space<semaphore_mem>>
    tpu.wait_dma2 semaphore(%139 : memref<!tpu.dma_semaphore, #tpu.memory_space<semaphore_mem>>) src(%136 : memref<1x32xf32, #tpu.memory_space<any>>) dst(%137 : memref<1x32xf32, #tpu.memory_space<vmem>>)
    %c15_i32_108 = arith.constant 15 : i32
    %c0_i32_109 = arith.constant 0 : i32
    %140 = tpu.memref_slice %arg2[%75, %c0_i32_109] : memref<128x32xf32, #tpu.memory_space<any>> -> memref<1x32xf32, #tpu.memory_space<any>>
    %c15_i32_110 = arith.constant 15 : i32
    %c0_i32_111 = arith.constant 0 : i32
    %141 = tpu.memref_slice %arg7[%c15_i32_110, %c0_i32_111] : memref<16x32xf32, #tpu.memory_space<vmem>> -> memref<1x32xf32, #tpu.memory_space<vmem>>
    %142 = tpu.memref_slice %arg8[%c15_i32_108] : memref<16x!tpu.dma_semaphore, #tpu.memory_space<semaphore_mem>> -> memref<1x!tpu.dma_semaphore, #tpu.memory_space<semaphore_mem>>
    %143 = tpu.memref_squeeze %142 : memref<1x!tpu.dma_semaphore, #tpu.memory_space<semaphore_mem>> -> memref<!tpu.dma_semaphore, #tpu.memory_space<semaphore_mem>>
    tpu.wait_dma2 semaphore(%143 : memref<!tpu.dma_semaphore, #tpu.memory_space<semaphore_mem>>) src(%140 : memref<1x32xf32, #tpu.memory_space<any>>) dst(%141 : memref<1x32xf32, #tpu.memory_space<vmem>>)
    %c0_112 = arith.constant 0 : index
    %c0_113 = arith.constant 0 : index
    %144 = vector.load %arg7[%c0_112, %c0_113] : memref<16x32xf32, #tpu.memory_space<vmem>>, vector<16x32xf32>
    %c0_114 = arith.constant 0 : index
    %c0_115 = arith.constant 0 : index
    %145 = vector.load %arg3[%c0_114, %c0_115] : memref<8x32xf32, #tpu.memory_space<vmem>>, vector<8x32xf32>
    %146 = tpu.concatenate %145, %145 in 0 : vector<8x32xf32>, vector<8x32xf32> -> vector<16x32xf32>
    %147 = arith.addf %144, %146 : vector<16x32xf32>
    %cst = arith.constant dense<0.000000e+00> : vector<16xf32>
    %148 = vector.multi_reduction <add>, %147, %cst [1] : vector<16x32xf32> to vector<16xf32>
    %149 = vector.shape_cast %148 : vector<16xf32> to vector<16x1xf32>
    %cst_116 = arith.constant 3.200000e+01 : f32
    %150 = vector.broadcast %cst_116 : f32 to vector<16x1xf32>
    %151 = arith.divf %149, %150 : vector<16x1xf32>
    %152 = vector.broadcast %151 : vector<16x1xf32> to vector<16x32xf32>
    %153 = arith.subf %147, %152 : vector<16x32xf32>
    %154 = arith.mulf %153, %153 : vector<16x32xf32>
    %cst_117 = arith.constant dense<0.000000e+00> : vector<16xf32>
    %155 = vector.multi_reduction <add>, %154, %cst_117 [1] : vector<16x32xf32> to vector<16xf32>
    %156 = vector.shape_cast %155 : vector<16xf32> to vector<16x1xf32>
    %cst_118 = arith.constant 3.200000e+01 : f32
    %157 = vector.broadcast %cst_118 : f32 to vector<16x1xf32>
    %158 = arith.divf %156, %157 : vector<16x1xf32>
    %cst_119 = arith.constant 9.99999996E-13 : f32
    %159 = vector.broadcast %cst_119 : f32 to vector<16x1xf32>
    %160 = arith.addf %158, %159 : vector<16x1xf32>
    %161 = math.rsqrt %160 : vector<16x1xf32>
    %162 = vector.broadcast %161 : vector<16x1xf32> to vector<16x32xf32>
    %163 = arith.mulf %153, %162 : vector<16x32xf32>
    %c0_120 = arith.constant 0 : index
    %c0_121 = arith.constant 0 : index
    %164 = vector.load %arg4[%c0_120, %c0_121] : memref<1x32xf32, #tpu.memory_space<vmem>>, vector<1x32xf32>
    %165 = vector.broadcast %164 : vector<1x32xf32> to vector<16x32xf32>
    %166 = arith.mulf %163, %165 : vector<16x32xf32>
    %c0_122 = arith.constant 0 : index
    %c0_123 = arith.constant 0 : index
    %167 = vector.load %arg5[%c0_122, %c0_123] : memref<1x32xf32, #tpu.memory_space<vmem>>, vector<1x32xf32>
    %168 = vector.broadcast %167 : vector<1x32xf32> to vector<16x32xf32>
    %169 = arith.addf %166, %168 : vector<16x32xf32>
    %c0_124 = arith.constant 0 : index
    %c0_125 = arith.constant 0 : index
    %170 = vector.load %arg6[%c0_124, %c0_125] : memref<16x32xf32, #tpu.memory_space<vmem>>, vector<16x32xf32>
    tpu.vector_store %arg6[%c0_124, %c0_125], %169 {strides = array<i32>} : memref<16x32xf32, #tpu.memory_space<vmem>>, vector<16x32xf32>,
    return
  }
  func.func @transform_1(%arg0: i32, %arg1: memref<16xi32, #tpu.memory_space<smem>>) -> (i32, i32) {
    %c0_i32 = arith.constant 0 : i32
    %c0_i32_0 = arith.constant 0 : i32
    %c0_i32_1 = arith.constant 0 : i32
    return %c0_i32, %c0_i32_0 : i32, i32
  }
  func.func @transform_2(%arg0: i32, %arg1: memref<16xi32, #tpu.memory_space<smem>>) -> (i32, i32) {
    %c0_i32 = arith.constant 0 : i32
    %c0_i32_0 = arith.constant 0 : i32
    %c0_i32_1 = arith.constant 0 : i32
    return %c0_i32, %c0_i32_0 : i32, i32
  }
  func.func @transform_3(%arg0: i32, %arg1: memref<16xi32, #tpu.memory_space<smem>>) -> (i32, i32) {
    %c0_i32 = arith.constant 0 : i32
    %c0_i32_0 = arith.constant 0 : i32
    %c0_i32_1 = arith.constant 0 : i32
    return %c0_i32, %c0_i32_0 : i32, i32
  }
  func.func @transform_4(%arg0: i32, %arg1: memref<16xi32, #tpu.memory_space<smem>>) -> (i32, i32) {
    %c0_i32 = arith.constant 0 : i32
    %c0_i32_0 = arith.constant 0 : i32
    %c0_i32_1 = arith.constant 0 : i32
    return %c0_i32, %c0_i32_0 : i32, i32
  }
}

</mosaic_0001>

<bundles_post_ra>
// kernel: tpu_custom_call.1
= control target key start
LH: loop header
LB: loop body
LE: loop exit
PB: predicated region body
PF: predicated region fallthrough
CT: control target
= control target key end

     0   :  { %s1416_s0 = inlined_call_operand.vmem [shape: s32[16], index: 0, kind: input, shape index: {}]   ;;  %s1417_s1 = inlined_call_operand.vmem [shape: f32[128,32], index: 1, kind: input, shape index: {}]   ;;  %s1418_s2 = inlined_call_operand.vmem [shape: f32[8,32], index: 2, kind: input, shape index: {}]   ;;  %s1419_s3 = inlined_call_operand.vmem [shape: f32[1,32], index: 3, kind: input, shape index: {}]   ;;  %s1420_s4 = inlined_call_operand.vmem [shape: f32[1,32], index: 4, kind: input, shape index: {}]   ;;  %s1421_s5 = inlined_call_operand.hbm [shape: f32[16,32], index: 5, kind: output, shape index: {}]  }
   0x1   :  { %s10_s20 = sshll.u32 %s1416_s0, 4  ;;  %s11_s20 = int_to_ptr.vmem [resolvable:$true] %s10_s20 }
   0x2   :  { %s1234_s21 = scalar_lea.vmem %s11_s20, 16  ;;  %p1239_p1 = scmp.lt.s32.totalorder %s11_s20, %s11_s20 }
   0x3   :  { %p1235_p0 = scmp.ne.s32.totalorder %s11_s20, %s1234_s21  ;;  %p1240_p2 = scmp.lt.s32.totalorder %s1234_s21, %s1234_s21 }
   0x5   :  { %p1241_p3 = por %p1240_p2, %p1239_p1 }
   0x7   :  { %p1242_p4 = pnand %p1241_p3, %p1235_p0 }
   0x9   :  { %1245 = shalt.err (!%p1242_p4)  }
   0xa   :  { %s1304_s22 = smov [#allocation5]  }
   0xb   :  { %13 = dma.vmem_to_smem %s11_s20, 16, %s1304_s22, [#allocation4] }
   0xc   :  { %1268 = dma.done.wait [#allocation4], 16 }
   0xd   :  { %1269 = vsyncadd [#allocation4], 4294967280 }
   0xe   :  { %15 = sfence }
   0xf   :  { %16 = vsyncpa [#allocation7], 0  ;;  %s23_s23 = sld [smem:[#allocation5]] }
  0x15   :  { %s24_s26 = scalar_lea.vmem %s1417_s1, %s23_s23 }
  0x16   :  { %v42_v0 = vld [vmem:[%s24_s26] sm:$0x1] }
  0x17   :  { %43 = vst [vmem:[#allocation2] sm:$0x1] %v42_v0 }
  0x18   :  { %68 = vsyncadd [#allocation3], 16  ;;  %s1193_s0 = sld [smem:[#allocation5 + $0x1]] }
  0x1e   :  { %s70_s29 = scalar_lea.vmem %s1417_s1, %s1193_s0 }
  0x1f   :  { %v90_v1 = vld [vmem:[%s70_s29] sm:$0x1] }
  0x20   :  { %91 = vst [vmem:[#allocation2 + $0x1] sm:$0x1] %v90_v1 }
  0x21   :  { %116 = vsyncadd [#allocation3 + $0x1], 16  ;;  %s1194_s30 = sld [smem:[#allocation5 + $0x2]] }
  0x27   :  { %s118_s8 = scalar_lea.vmem %s1417_s1, %s1194_s30 }
  0x28   :  { %v138_v2 = vld [vmem:[%s118_s8] sm:$0x1] }
  0x29   :  { %139 = vst [vmem:[#allocation2 + $0x2] sm:$0x1] %v138_v2 }
  0x2a   :  { %164 = vsyncadd [#allocation3 + $0x2], 16  ;;  %s1195_s9 = sld [smem:[#allocation5 + $0x3]] }
  0x30   :  { %s166_s12 = scalar_lea.vmem %s1417_s1, %s1195_s9 }
  0x31   :  { %v186_v3 = vld [vmem:[%s166_s12] sm:$0x1] }
  0x32   :  { %187 = vst [vmem:[#allocation2 + $0x3] sm:$0x1] %v186_v3 }
  0x33   :  { %212 = vsyncadd [#allocation3 + $0x3], 16  ;;  %s1196_s13 = sld [smem:[#allocation5 + $0x4]] }
  0x39   :  { %s214_s16 = scalar_lea.vmem %s1417_s1, %s1196_s13 }
  0x3a   :  { %v234_v4 = vld [vmem:[%s214_s16] sm:$0x1] }
  0x3b   :  { %235 = vst [vmem:[#allocation2 + $0x4] sm:$0x1] %v234_v4 }
  0x3c   :  { %260 = vsyncadd [#allocation3 + $0x4], 16  ;;  %s1197_s17 = sld [smem:[#allocation5 + $0x5]] }
  0x42   :  { %s262_s20 = scalar_lea.vmem %s1417_s1, %s1197_s17 }
  0x43   :  { %v282_v5 = vld [vmem:[%s262_s20] sm:$0x1] }
  0x44   :  { %283 = vst [vmem:[#allocation2 + $0x5] sm:$0x1] %v282_v5 }
  0x45   :  { %308 = vsyncadd [#allocation3 + $0x5], 16  ;;  %s1198_s21 = sld [smem:[#allocation5 + $0x6]] }
  0x4b   :  { %s310_s24 = scalar_lea.vmem %s1417_s1, %s1198_s21 }
  0x4c   :  { %v330_v6 = vld [vmem:[%s310_s24] sm:$0x1] }
  0x4d   :  { %331 = vst [vmem:[#allocation2 + $0x6] sm:$0x1] %v330_v6 }
  0x4e   :  { %356 = vsyncadd [#allocation3 + $0x6], 16  ;;  %s1199_s25 = sld [smem:[#allocation5 + $0x7]] }
  0x54   :  { %s358_s27 = scalar_lea.vmem %s1417_s1, %s1199_s25 }
  0x55   :  { %v378_v7 = vld [vmem:[%s358_s27] sm:$0x1] }
  0x56   :  { %379 = vst [vmem:[#allocation2 + $0x7] sm:$0x1] %v378_v7 }
  0x57   :  { %404 = vsyncadd [#allocation3 + $0x7], 16  ;;  %s1200_s28 = sld [smem:[#allocation5 + $0x8]] }
  0x5d   :  { %s406_s6 = scalar_lea.vmem %s1417_s1, %s1200_s28 }
  0x5e   :  { %v426_v8 = vld [vmem:[%s406_s6] sm:$0x1] }
  0x5f   :  { %427 = vst [vmem:[#allocation2 + $0x8] sm:$0x1] %v426_v8 }
  0x60   :  { %452 = vsyncadd [#allocation3 + $0x8], 16  ;;  %s1201_s7 = sld [smem:[#allocation5 + $0x9]] }
  0x66   :  { %s454_s10 = scalar_lea.vmem %s1417_s1, %s1201_s7 }
  0x67   :  { %v474_v9 = vld [vmem:[%s454_s10] sm:$0x1] }
  0x68   :  { %475 = vst [vmem:[#allocation2 + $0x9] sm:$0x1] %v474_v9 }
  0x69   :  { %500 = vsyncadd [#allocation3 + $0x9], 16  ;;  %s1202_s11 = sld [smem:[#allocation5 + $0xa]] }
  0x6f   :  { %s502_s14 = scalar_lea.vmem %s1417_s1, %s1202_s11 }
  0x70   :  { %v522_v10 = vld [vmem:[%s502_s14] sm:$0x1] }
  0x71   :  { %523 = vst [vmem:[#allocation2 + $0xa] sm:$0x1] %v522_v10 }
  0x72   :  { %548 = vsyncadd [#allocation3 + $0xa], 16  ;;  %s1203_s15 = sld [smem:[#allocation5 + $0xb]] }
  0x78   :  { %s550_s18 = scalar_lea.vmem %s1417_s1, %s1203_s15 }
  0x79   :  { %v570_v11 = vld [vmem:[%s550_s18] sm:$0x1] }
  0x7a   :  { %571 = vst [vmem:[#allocation2 + $0xb] sm:$0x1] %v570_v11 }
  0x7b   :  { %596 = vsyncadd [#allocation3 + $0xb], 16  ;;  %s1204_s19 = sld [smem:[#allocation5 + $0xc]] }
  0x81   :  { %s598_s22 = scalar_lea.vmem %s1417_s1, %s1204_s19 }
  0x82   :  { %v618_v12 = vld [vmem:[%s598_s22] sm:$0x1] }
  0x83   :  { %619 = vst [vmem:[#allocation2 + $0xc] sm:$0x1] %v618_v12 }
  0x84   :  { %644 = vsyncadd [#allocation3 + $0xc], 16  ;;  %s1205_s23 = sld [smem:[#allocation5 + $0xd]] }
  0x8a   :  { %s646_s26 = scalar_lea.vmem %s1417_s1, %s1205_s23 }
  0x8b   :  { %v666_v13 = vld [vmem:[%s646_s26] sm:$0x1] }
  0x8c   :  { %667 = vst [vmem:[#allocation2 + $0xd] sm:$0x1] %v666_v13 }
  0x8d   :  { %692 = vsyncadd [#allocation3 + $0xd], 16  ;;  %s1206_s0 = sld [smem:[#allocation5 + $0xe]] }
  0x93   :  { %s694_s29 = scalar_lea.vmem %s1417_s1, %s1206_s0 }
  0x94   :  { %v714_v14 = vld [vmem:[%s694_s29] sm:$0x1] }
  0x95   :  { %715 = vst [vmem:[#allocation2 + $0xe] sm:$0x1] %v714_v14 }
  0x96   :  { %740 = vsyncadd [#allocation3 + $0xe], 16  ;;  %s1207_s30 = sld [smem:[#allocation5 + $0xf]] }
  0x9c   :  { %s742_s8 = scalar_lea.vmem %s1417_s1, %s1207_s30 }
  0x9d   :  { %v762_v15 = vld [vmem:[%s742_s8] sm:$0x1] }
  0x9e   :  { %763 = vst [vmem:[#allocation2 + $0xf] sm:$0x1] %v762_v15 }
  0x9f   :  { %788 = vsyncadd [#allocation3 + $0xf], 16 }
  0xa0   :  { %1270 = dma.done.wait [#allocation3], 16 }
  0xa1   :  { %1271 = vsyncadd [#allocation3], 4294967280 }
  0xa2   :  { %1272 = dma.done.wait [#allocation3 + $0x1], 16 }
  0xa3   :  { %1273 = vsyncadd [#allocation3 + $0x1], 4294967280 }
  0xa4   :  { %1274 = dma.done.wait [#allocation3 + $0x2], 16 }
  0xa5   :  { %1275 = vsyncadd [#allocation3 + $0x2], 4294967280 }
  0xa6   :  { %1276 = dma.done.wait [#allocation3 + $0x3], 16 }
  0xa7   :  { %1277 = vsyncadd [#allocation3 + $0x3], 4294967280 }
  0xa8   :  { %1278 = dma.done.wait [#allocation3 + $0x4], 16 }
  0xa9   :  { %1279 = vsyncadd [#allocation3 + $0x4], 4294967280 }
  0xaa   :  { %1280 = dma.done.wait [#allocation3 + $0x5], 16 }
  0xab   :  { %1281 = vsyncadd [#allocation3 + $0x5], 4294967280 }
  0xac   :  { %1282 = dma.done.wait [#allocation3 + $0x6], 16 }
  0xad   :  { %1283 = vsyncadd [#allocation3 + $0x6], 4294967280 }
  0xae   :  { %1284 = dma.done.wait [#allocation3 + $0x7], 16 }
  0xaf   :  { %1285 = vsyncadd [#allocation3 + $0x7], 4294967280 }
  0xb0   :  { %1286 = dma.done.wait [#allocation3 + $0x8], 16 }
  0xb1   :  { %1287 = vsyncadd [#allocation3 + $0x8], 4294967280 }
  0xb2   :  { %1288 = dma.done.wait [#allocation3 + $0x9], 16 }
  0xb3   :  { %1289 = vsyncadd [#allocation3 + $0x9], 4294967280 }
  0xb4   :  { %1290 = dma.done.wait [#allocation3 + $0xa], 16 }
  0xb5   :  { %1291 = vsyncadd [#allocation3 + $0xa], 4294967280 }
  0xb6   :  { %1292 = dma.done.wait [#allocation3 + $0xb], 16 }
  0xb7   :  { %1293 = vsyncadd [#allocation3 + $0xb], 4294967280 }
  0xb8   :  { %1294 = dma.done.wait [#allocation3 + $0xc], 16 }
  0xb9   :  { %1295 = vsyncadd [#allocation3 + $0xc], 4294967280 }
  0xba   :  { %1296 = dma.done.wait [#allocation3 + $0xd], 16 }
  0xbb   :  { %1297 = vsyncadd [#allocation3 + $0xd], 4294967280 }
  0xbc   :  { %1298 = dma.done.wait [#allocation3 + $0xe], 16 }
  0xbd   :  { %1299 = vsyncadd [#allocation3 + $0xe], 4294967280 }
  0xbe   :  { %1300 = dma.done.wait [#allocation3 + $0xf], 16 }
  0xbf   :  { %1301 = vsyncadd [#allocation3 + $0xf], 4294967280  ;;  %v822_v16 = vld [vmem:[#allocation2] sm:$0xff]  ;;  %vm827_vm0 = vcmask 261120   ;;  %v823_v18 = vld [vmem:[#allocation2 + $0x8] sm:$0xff]  ;;  %s1305_s13 = smov [#allocation6]  }
  0xc0   :  { %v824_v17 = vld [vmem:[%s1418_s2] sm:$0xff]  ;;  %s880_s14 = sshll.u32 %s1305_s13, 4  ;;  %s881_s14 = int_to_ptr.vmem [resolvable:$true] %s880_s14 }
  0xc1   :  { %v825_v19 = vadd.f32 %v824_v17, %v822_v16  ;;  %v826_v20 = vadd.f32 %v824_v17, %v823_v18  ;;  %v1208_v40 = vld [vmem:[%s1419_s3] ss:$0 sm:$0xff]  ;;  %s1246_s15 = scalar_lea.vmem %s881_s14, 256  ;;  %p1251_p6 = scmp.lt.s32.totalorder %s881_s14, %s881_s14 }
  0xc2   :  { %v1209_v42 = vld [vmem:[%s1420_s4] ss:$0 sm:$0xff]  ;;  %p1247_p5 = scmp.ne.s32.totalorder %s881_s14, %s1246_s15  ;;  %p1252_p7 = scmp.lt.s32.totalorder %s1246_s15, %s1246_s15 }
  0xc3   :  { %v828_v21 = vsel %vm827_vm0, %v825_v19, 0.0  ;;  %v831_v22 = vsel %vm827_vm0, %v826_v20, 0.0 }
  0xc4   :  { %829 = vadd.xlane.f32.xlu0 %v828_v21  ;;  %p1253_p8 = por %p1252_p7, %p1251_p6 }
  0xc6   :  { %p1254_p9 = pnand %p1253_p8, %p1247_p5 }
  0xc8   :  { %832 = vadd.xlane.f32.xlu0 %v831_v22 }
 0x151   :  { %v830_v23 = vpop.xlane.xlu0 %829 }
 0x152   :  { %v835_v24 = vmul.f32 0.03125, %v830_v23 }
 0x154   :  { %v837_v25 = vsub.f32 %v825_v19, %v835_v24 }
 0x155   :  { %v833_v26 = vpop.xlane.xlu0 %832 }
 0x156   :  { %v836_v27 = vmul.f32 0.03125, %v833_v26  ;;  %v839_v28 = vmul.f32 %v837_v25, %v837_v25 }
 0x158   :  { %v838_v29 = vsub.f32 %v826_v20, %v836_v27  ;;  %v841_v30 = vsel %vm827_vm0, %v839_v28, 0.0 }
 0x159   :  { %842 = vadd.xlane.f32.xlu1 %v841_v30 }
 0x15a   :  { %v840_v31 = vmul.f32 %v838_v29, %v838_v29 }
 0x15c   :  { %v844_v32 = vsel %vm827_vm0, %v840_v31, 0.0 }
 0x15d   :  { %845 = vadd.xlane.f32.xlu1 %v844_v32 }
 0x1e6   :  { %v843_v33 = vpop.xlane.xlu1 %842 }
 0x1e7   :  { %v847_v34 = vmul.f32 0.03125, %v843_v33 }
 0x1e9   :  { %v849_v35 = vadd.f32 1e-12, %v847_v34 }
 0x1ea   :  { %v846_v36 = vpop.xlane.xlu1 %845 }
 0x1eb   :  { %1230 = vrsqrt.f32 %v849_v35  ;;  %v848_v37 = vmul.f32 0.03125, %v846_v36 }
 0x1ed   :  { %v850_v38 = vadd.f32 1e-12, %v848_v37 }
 0x1ef   :  { %1232 = vrsqrt.f32 %v850_v38 }
 0x1f5   :  { %v1231_v39 = vpop.eup %1230 }
 0x1f6   :  { %v853_v41 = vmul.f32 %v1231_v39, %v837_v25 }
 0x1f8   :  { %v862_v43 = vmul.f32 %v1208_v40, %v853_v41 }
 0x1f9   :  { %v1233_v44 = vpop.eup %1232 }
 0x1fa   :  { %v854_v45 = vmul.f32 %v1233_v44, %v838_v29  ;;  %v871_v46 = vadd.f32 %v1209_v42, %v862_v43 }
 0x1fc   :  { %v863_v47 = vmul.f32 %v1208_v40, %v854_v45  ;;  %873 = vst.msk [vmem:[#allocation6] sm:$0xff] %vm827_vm0, %v871_v46 }
 0x1fe   :  { %v872_v48 = vadd.f32 %v1209_v42, %v863_v47 }
 0x200   :  { %874 = vst.msk [vmem:[#allocation6 + $0x8] sm:$0xff] %vm827_vm0, %v872_v48 }
 0x201   :  { %1257 = shalt.err (!%p1254_p9)
}
 0x202   :  { %s1258_s16 = scalar_lea.hbm %s1421_s5, 256 }
 0x203   :  { %p1259_p10 = scmp.ne.s32.totalorder %s1421_s5, %s1258_s16  ;;  %p1262_p11 = scmp.lt.u32.totalorder %s1258_s16, %s1421_s5 }
 0x205   :  { %p1264_p12 = pnand %p1262_p11, %p1259_p10 }
 0x207   :  { %1267 = shalt.err (!%p1264_p12)
}
 0x208   :  { %s1306_s21 = smov 128   ;;  %s1307_s22 = smov 8  }
 0x209   :  { %886 = dma.vmem_to_hbm [thread:$0]  %s881_s14, 256, %s1421_s5, [#allocation7], %s1306_s21, %s1306_s21, %s1307_s22  }
 0x20a   :  { %1302 = dma.done.wait [#allocation7], 256  }
 0x20b   :  { %1303 = vsyncadd [#allocation7], 4294967040 }
 0x20c   :  { %890 = vsyncpa [#allocation7], 1 }
 0x20d   :  { %891 = vsyncmov [#allocation3] }
 0x210   :  { %s892_s25 = vpop.sfrf %891 }
 0x211   :  { %p1210_p13 = scmp.ne.s32.totalorder %s892_s25, 0 }
 0x213   :  { %896 = shalt.err (%p1210_p13)  }
 0x214   :  { %898 = vsyncmov [#allocation3 + $0x1] }
 0x217   :  { %s899_s26 = vpop.sfrf %898 }
 0x218   :  { %p1211_p0 = scmp.ne.s32.totalorder %s899_s26, 0 }
 0x21a   :  { %903 = shalt.err (%p1211_p0)  }
 0x21b   :  { %905 = vsyncmov [#allocation3 + $0x2] }
 0x21e   :  { %s906_s0 = vpop.sfrf %905 }
 0x21f   :  { %p1212_p1 = scmp.ne.s32.totalorder %s906_s0, 0 }
 0x221   :  { %910 = shalt.err (%p1212_p1)  }
 0x222   :  { %912 = vsyncmov [#allocation3 + $0x3] }
 0x225   :  { %s913_s27 = vpop.sfrf %912 }
 0x226   :  { %p1213_p2 = scmp.ne.s32.totalorder %s913_s27, 0 }
 0x228   :  { %917 = shalt.err (%p1213_p2)  }
 0x229   :  { %919 = vsyncmov [#allocation3 + $0x4] }
 0x22c   :  { %s920_s5 = vpop.sfrf %919 }
 0x22d   :  { %p1214_p3 = scmp.ne.s32.totalorder %s920_s5, 0 }
 0x22f   :  { %924 = shalt.err (%p1214_p3)  }
 0x230   :  { %926 = vsyncmov [#allocation3 + $0x5] }
 0x233   :  { %s927_s28 = vpop.sfrf %926 }
 0x234   :  { %p1215_p4 = scmp.ne.s32.totalorder %s927_s28, 0 }
 0x236   :  { %931 = shalt.err (%p1215_p4)  }
 0x237   :  { %933 = vsyncmov [#allocation3 + $0x6] }
 0x23a   :  { %s934_s29 = vpop.sfrf %933 }
 0x23b   :  { %p1216_p5 = scmp.ne.s32.totalorder %s934_s29, 0 }
 0x23d   :  { %938 = shalt.err (%p1216_p5)  }
 0x23e   :  { %940 = vsyncmov [#allocation3 + $0x7] }
 0x241   :  { %s941_s30 = vpop.sfrf %940 }
 0x242   :  { %p1217_p6 = scmp.ne.s32.totalorder %s941_s30, 0 }
 0x244   :  { %945 = shalt.err (%p1217_p6)  }
 0x245   :  { %947 = vsyncmov [#allocation3 + $0x8] }
 0x248   :  { %s948_s6 = vpop.sfrf %947 }
 0x249   :  { %p1218_p7 = scmp.ne.s32.totalorder %s948_s6, 0 }
 0x24b   :  { %952 = shalt.err (%p1218_p7)  }
 0x24c   :  { %954 = vsyncmov [#allocation3 + $0x9] }
 0x24f   :  { %s955_s7 = vpop.sfrf %954 }
 0x250   :  { %p1219_p8 = scmp.ne.s32.totalorder %s955_s7, 0 }
 0x252   :  { %959 = shalt.err (%p1219_p8)  }
 0x253   :  { %961 = vsyncmov [#allocation3 + $0xa] }
 0x256   :  { %s962_s8 = vpop.sfrf %961 }
 0x257   :  { %p1220_p9 = scmp.ne.s32.totalorder %s962_s8, 0 }
 0x259   :  { %966 = shalt.err (%p1220_p9)  }
 0x25a   :  { %968 = vsyncmov [#allocation3 + $0xb] }
 0x25d   :  { %s969_s1 = vpop.sfrf %968 }
 0x25e   :  { %p1221_p10 = scmp.ne.s32.totalorder %s969_s1, 0 }
 0x260   :  { %973 = shalt.err (%p1221_p10)  }
 0x261   :  { %975 = vsyncmov [#allocation3 + $0xc] }
 0x264   :  { %s976_s9 = vpop.sfrf %975 }
 0x265   :  { %p1222_p11 = scmp.ne.s32.totalorder %s976_s9, 0 }
 0x267   :  { %980 = shalt.err (%p1222_p11)  }
 0x268   :  { %982 = vsyncmov [#allocation3 + $0xd] }
 0x26b   :  { %s983_s2 = vpop.sfrf %982 }
 0x26c   :  { %p1223_p12 = scmp.ne.s32.totalorder %s983_s2, 0 }
 0x26e   :  { %987 = shalt.err (%p1223_p12)  }
 0x26f   :  { %989 = vsyncmov [#allocation3 + $0xe] }
 0x272   :  { %s990_s10 = vpop.sfrf %989 }
 0x273   :  { %p1224_p13 = scmp.ne.s32.totalorder %s990_s10, 0 }
 0x275   :  { %994 = shalt.err (%p1224_p13)  }
 0x276   :  { %996 = vsyncmov [#allocation3 + $0xf] }
 0x279   :  { %s997_s11 = vpop.sfrf %996 }
 0x27a   :  { %p1225_p0 = scmp.ne.s32.totalorder %s997_s11, 0 }
 0x27c   :  { %1001 = shalt.err (%p1225_p0)  }

</bundles_post_ra>
